<compile_context>
chip_gen: v7x
topology: tpu7x:2x2x1
jax: 0.10.0
libtpu: 0.0.40
codegen_flags: <defaults>
</compile_context>

<pallas_src>
import jax
import jax.numpy as jnp
from jax.experimental import pallas as pl
from jax.experimental.pallas import tpu as pltpu

LANE = 128


def make_levelnet_kernel(level):
    """Kernel computing the whole LevelNet chain on one feature-major batch tile."""
    num_hidden = 2 ** level          # loop iterations in forward()
    n_layers = num_hidden + 1        # total nn.Linear layers

    def kernel(*refs):
        x_ref = refs[0]                                   # (dim_in, tile_b)
        param_refs = refs[1:1 + 2 * n_layers]             # (wT0, b0, wT1, b1, ...)
        out_refs = refs[1 + 2 * n_layers:]

        # tensor = dense_layers[0](tensor)   (feature-major: t = W0^T @ x + b0)
        t = jnp.dot(param_refs[0][...], x_ref[...],
                    preferred_element_type=jnp.float32) + param_refs[1][...]

        out_idx = 0
        for i in range(num_hidden):
            # self.norm_layers is None in this config, so no norm.
            t = jnp.maximum(t, 0.0)                       # activation (ReLU), lane-dense
            w = param_refs[2 * (i + 1)][...]              # (dout, din) transposed weight
            b = param_refs[2 * (i + 1) + 1][...]          # (dout, 1) column bias
            t = jnp.dot(w, t, preferred_element_type=jnp.float32) + b
            # res_tensors is None -> no residual add.
            if (i % 2 == 1) or (level == 0):
                out_refs[out_idx][...] = t                # lane-dense (dout, tile_b) store
                out_idx += 1
        # TODO(synk): norm_layers / res_tensors code paths are None in this config and not implemented.

    return kernel


def _num_parallel_batch_tiles():
    """Best-effort count of TensorCores sharing one Pallas grid (v7x / megacore = 2)."""
    try:
        dev = jax.devices()[0]
        kind = str(getattr(dev, "device_kind", "")).lower()
        if any(tag in kind for tag in ("v7", "7x", "v4", "v5p")):
            return 2
    except Exception:
        pass
    return 1


def levelnet_forward(x, weights, biases, level, tile_b=None, num_parallel_tiles=None,
                     max_tile_b=4096):
    """Wrapper: feature-major layout, batch-tiled grid, resident params in VMEM."""
    num_hidden = 2 ** level
    n_layers = num_hidden + 1
    assert len(weights) == n_layers and len(biases) == n_layers

    x = jnp.asarray(x, jnp.float32)
    B, dim_in = x.shape

    # Feature-major parameters: W^T of shape (dout, din), column bias (dout, 1).
    wts = [jnp.asarray(w, jnp.float32).T for w in weights]
    bcs = [jnp.asarray(b, jnp.float32).reshape(-1, 1) for b in biases]

    if num_parallel_tiles is None:
        num_parallel_tiles = _num_parallel_batch_tiles()

    # One fat batch tile per TensorCore (per-step overhead ~0.35us), capped so the
    # per-step working set stays a few MB (safe inside v7x's 64 MiB VMEM too).
    if tile_b is None:
        tile_b = pl.cdiv(B, num_parallel_tiles)
    tile_b = min(max(int(tile_b), 1), max_tile_b)
    tile_b = ((tile_b + LANE - 1) // LANE) * LANE        # batch sits on the 128-lane axis
    grid_b = pl.cdiv(B, tile_b)
    b_pad = grid_b * tile_b

    # Batch on lanes: DMA a lane-dense (dim_in, B) slab instead of a narrow (B, 16).
    xt = x.T
    if b_pad != B:
        xt = jnp.pad(xt, ((0, 0), (0, b_pad - B)))

    inputs = [xt]
    in_specs = [pl.BlockSpec((dim_in, tile_b), lambda i: (0, i))]
    for wt, bc in zip(wts, bcs):
        inputs.append(wt)
        inputs.append(bc)
        # Constant block index -> parameters stay resident in VMEM across grid steps.
        in_specs.append(pl.BlockSpec(wt.shape, lambda i: (0, 0)))
        in_specs.append(pl.BlockSpec(bc.shape, lambda i: (0, 0)))

    out_shapes, out_specs, out_widths = [], [], []
    for hidden_i in range(num_hidden):
        if (hidden_i % 2 == 1) or (level == 0):
            dout = wts[hidden_i + 1].shape[0]            # true width, no lane padding
            out_widths.append(dout)
            out_shapes.append(jax.ShapeDtypeStruct((dout, b_pad), jnp.float32))
            out_specs.append(pl.BlockSpec((dout, tile_b), lambda i: (0, i)))

    # Honest cost estimate over the true (unpadded) layer widths.
    flops = 2 * b_pad * sum(int(w.shape[0]) * int(w.shape[1]) for w in wts)
    param_bytes = 4 * sum(int(w.size) + int(b.size) for w, b in zip(wts, bcs))
    out_bytes = 4 * b_pad * sum(out_widths)
    cost = pl.CostEstimate(
        flops=flops,
        transcendentals=0,
        bytes_accessed=int(param_bytes + 4 * int(xt.size) + out_bytes),
    )

    outs = pl.pallas_call(
        make_levelnet_kernel(level),
        out_shape=tuple(out_shapes),
        grid=(grid_b,),
        in_specs=in_specs,
        out_specs=tuple(out_specs),
        compiler_params=pltpu.CompilerParams(
            dimension_semantics=("parallel",)),
        cost_estimate=cost,
    )(*inputs)

    # Back to the PyTorch output layout: strip batch padding, transpose to (B, dout).
    return [o[:, :B].T for o in outs]


def levelnet_reference(x, weights, biases, level):
    """Pure-JAX reference matching the PyTorch forward semantics."""
    num_hidden = 2 ** level
    t = x @ weights[0] + biases[0]
    outs = []
    for i in range(num_hidden):
        t = jnp.maximum(t, 0.0)
        t = t @ weights[i + 1] + biases[i + 1]
        if (i % 2 == 1) or (level == 0):
            outs.append(t)
    return outs


if __name__ == "__main__":
    LEVEL = 2       # => dense_layers: Linear(DIM_IN,DIM), 3x Linear(DIM,DIM), Linear(DIM,1)
    DIM_IN = 16
    DIM = 32
    BATCH = 512     # one fat batch tile per TensorCore (grid=1 on 1-TC chips, 2 on v7x)

    # Deterministic parameter init (uniform(-1/sqrt(fan_in), 1/sqrt(fan_in)), like nn.Linear).
    key = jax.random.PRNGKey(0)
    layer_dims = [(DIM_IN, DIM)] + [(DIM, DIM)] * (2 ** LEVEL - 1) + [(DIM, 1)]
    weights, biases = [], []
    for (din, dout) in layer_dims:
        key, wk, bk = jax.random.split(key, 3)
        scale = 1.0 / float(din) ** 0.5
        weights.append(jax.random.uniform(wk, (din, dout), jnp.float32, -scale, scale))
        biases.append(jax.random.uniform(bk, (dout,), jnp.float32, -scale, scale))

    key, xk = jax.random.split(key)
    x = jax.random.normal(xk, (BATCH, DIM_IN), dtype=jnp.float32)

    outs = levelnet_forward(x, weights, biases, LEVEL)
    outs = jax.block_until_ready(outs)

    refs = levelnet_reference(x, weights, biases, LEVEL)
    assert len(outs) == len(refs)
    for o, r in zip(outs, refs):
        assert o.shape == r.shape, (o.shape, r.shape)
        assert jnp.allclose(o, r, atol=1e-5, rtol=1e-5), float(jnp.max(jnp.abs(o - r)))

    print("KERNEL_OK")
</pallas_src>

<mosaic_0001>
module attributes {stable_mosaic.version = 11 : i64} {
  func.func @kernel(%arg0: i32, %arg1: memref<16x512xf32, #tpu.memory_space<vmem>>, %arg2: memref<32x16xf32, #tpu.memory_space<vmem>>, %arg3: memref<32x1xf32, #tpu.memory_space<vmem>>, %arg4: memref<32x32xf32, #tpu.memory_space<vmem>>, %arg5: memref<32x1xf32, #tpu.memory_space<vmem>>, %arg6: memref<32x32xf32, #tpu.memory_space<vmem>>, %arg7: memref<32x1xf32, #tpu.memory_space<vmem>>, %arg8: memref<32x32xf32, #tpu.memory_space<vmem>>, %arg9: memref<32x1xf32, #tpu.memory_space<vmem>>, %arg10: memref<1x32xf32, #tpu.memory_space<vmem>>, %arg11: memref<1x1xf32, #tpu.memory_space<vmem>>, %arg12: memref<32x512xf32, #tpu.memory_space<vmem>>, %arg13: memref<1x512xf32, #tpu.memory_space<vmem>>) attributes {dimension_semantics = [#tpu.dimension_semantics<parallel>], iteration_bounds = array<i64: 1>, scalar_prefetch = 0 : i64, scratch_operands = 0 : i64, tpu.core_type = #tpu.core_type<tc>, window_params = [{transform_indices = @transform_0, window_bounds = array<i64: 16, 512>}, {pipeline_mode = #tpu.pipeline_mode<synchronous>, transform_indices = @transform_1, window_bounds = array<i64: 32, 16>}, {pipeline_mode = #tpu.pipeline_mode<synchronous>, transform_indices = @transform_2, window_bounds = array<i64: 32, 1>}, {pipeline_mode = #tpu.pipeline_mode<synchronous>, transform_indices = @transform_3, window_bounds = array<i64: 32, 32>}, {pipeline_mode = #tpu.pipeline_mode<synchronous>, transform_indices = @transform_4, window_bounds = array<i64: 32, 1>}, {pipeline_mode = #tpu.pipeline_mode<synchronous>, transform_indices = @transform_5, window_bounds = array<i64: 32, 32>}, {pipeline_mode = #tpu.pipeline_mode<synchronous>, transform_indices = @transform_6, window_bounds = array<i64: 32, 1>}, {pipeline_mode = #tpu.pipeline_mode<synchronous>, transform_indices = @transform_7, window_bounds = array<i64: 32, 32>}, {pipeline_mode = #tpu.pipeline_mode<synchronous>, transform_indices = @transform_8, window_bounds = array<i64: 32, 1>}, {pipeline_mode = #tpu.pipeline_mode<synchronous>, transform_indices = @transform_9, window_bounds = array<i64: 1, 32>}, {pipeline_mode = #tpu.pipeline_mode<synchronous>, transform_indices = @transform_10, window_bounds = array<i64: 1, 1>}, {transform_indices = @transform_11, window_bounds = array<i64: 32, 512>}, {transform_indices = @transform_12, window_bounds = array<i64: 1, 512>}]} {
    %c0 = arith.constant 0 : index
    %c0_0 = arith.constant 0 : index
    %0 = vector.load %arg2[%c0, %c0_0] : memref<32x16xf32, #tpu.memory_space<vmem>>, vector<32x16xf32>
    %c0_1 = arith.constant 0 : index
    %c0_2 = arith.constant 0 : index
    %1 = vector.load %arg1[%c0_1, %c0_2] : memref<16x512xf32, #tpu.memory_space<vmem>>, vector<16x512xf32>
    %cst = arith.constant dense<0.000000e+00> : vector<32x512xf32>
    %2 = tpu.matmul %0, %1, %cst {dimension_numbers = #tpu.dot_dimension_numbers<[1], [0], [0], [1], [0, 0, 1, 1], [], []>} : vector<32x16xf32>, vector<16x512xf32>, vector<32x512xf32> -> vector<32x512xf32>
    %c0_3 = arith.constant 0 : index
    %c0_4 = arith.constant 0 : index
    %3 = vector.load %arg3[%c0_3, %c0_4] : memref<32x1xf32, #tpu.memory_space<vmem>>, vector<32x1xf32>
    %4 = vector.broadcast %3 : vector<32x1xf32> to vector<32x512xf32>
    %5 = arith.addf %2, %4 : vector<32x512xf32>
    %cst_5 = arith.constant 0.000000e+00 : f32
    %6 = vector.broadcast %cst_5 : f32 to vector<32x512xf32>
    %7 = arith.maximumf %5, %6 : vector<32x512xf32>
    %c0_6 = arith.constant 0 : index
    %c0_7 = arith.constant 0 : index
    %8 = vector.load %arg4[%c0_6, %c0_7] : memref<32x32xf32, #tpu.memory_space<vmem>>, vector<32x32xf32>
    %c0_8 = arith.constant 0 : index
    %c0_9 = arith.constant 0 : index
    %9 = vector.load %arg5[%c0_8, %c0_9] : memref<32x1xf32, #tpu.memory_space<vmem>>, vector<32x1xf32>
    %cst_10 = arith.constant dense<0.000000e+00> : vector<32x512xf32>
    %10 = tpu.matmul %8, %7, %cst_10 {dimension_numbers = #tpu.dot_dimension_numbers<[1], [0], [0], [1], [0, 0, 1, 1], [], []>} : vector<32x32xf32>, vector<32x512xf32>, vector<32x512xf32> -> vector<32x512xf32>
    %11 = vector.broadcast %9 : vector<32x1xf32> to vector<32x512xf32>
    %12 = arith.addf %10, %11 : vector<32x512xf32>
    %cst_11 = arith.constant 0.000000e+00 : f32
    %13 = vector.broadcast %cst_11 : f32 to vector<32x512xf32>
    %14 = arith.maximumf %12, %13 : vector<32x512xf32>
    %c0_12 = arith.constant 0 : index
    %c0_13 = arith.constant 0 : index
    %15 = vector.load %arg6[%c0_12, %c0_13] : memref<32x32xf32, #tpu.memory_space<vmem>>, vector<32x32xf32>
    %c0_14 = arith.constant 0 : index
    %c0_15 = arith.constant 0 : index
    %16 = vector.load %arg7[%c0_14, %c0_15] : memref<32x1xf32, #tpu.memory_space<vmem>>, vector<32x1xf32>
    %cst_16 = arith.constant dense<0.000000e+00> : vector<32x512xf32>
    %17 = tpu.matmul %15, %14, %cst_16 {dimension_numbers = #tpu.dot_dimension_numbers<[1], [0], [0], [1], [0, 0, 1, 1], [], []>} : vector<32x32xf32>, vector<32x512xf32>, vector<32x512xf32> -> vector<32x512xf32>
    %18 = vector.broadcast %16 : vector<32x1xf32> to vector<32x512xf32>
    %19 = arith.addf %17, %18 : vector<32x512xf32>
    %c0_17 = arith.constant 0 : index
    %c0_18 = arith.constant 0 : index
    %20 = vector.load %arg12[%c0_17, %c0_18] : memref<32x512xf32, #tpu.memory_space<vmem>>, vector<32x512xf32>
    tpu.vector_store %arg12[%c0_17, %c0_18], %19 {strides = array<i32>} : memref<32x512xf32, #tpu.memory_space<vmem>>, vector<32x512xf32>,
    %cst_19 = arith.constant 0.000000e+00 : f32
    %21 = vector.broadcast %cst_19 : f32 to vector<32x512xf32>
    %22 = arith.maximumf %19, %21 : vector<32x512xf32>
    %c0_20 = arith.constant 0 : index
    %c0_21 = arith.constant 0 : index
    %23 = vector.load %arg8[%c0_20, %c0_21] : memref<32x32xf32, #tpu.memory_space<vmem>>, vector<32x32xf32>
    %c0_22 = arith.constant 0 : index
    %c0_23 = arith.constant 0 : index
    %24 = vector.load %arg9[%c0_22, %c0_23] : memref<32x1xf32, #tpu.memory_space<vmem>>, vector<32x1xf32>
    %cst_24 = arith.constant dense<0.000000e+00> : vector<32x512xf32>
    %25 = tpu.matmul %23, %22, %cst_24 {dimension_numbers = #tpu.dot_dimension_numbers<[1], [0], [0], [1], [0, 0, 1, 1], [], []>} : vector<32x32xf32>, vector<32x512xf32>, vector<32x512xf32> -> vector<32x512xf32>
    %26 = vector.broadcast %24 : vector<32x1xf32> to vector<32x512xf32>
    %27 = arith.addf %25, %26 : vector<32x512xf32>
    %cst_25 = arith.constant 0.000000e+00 : f32
    %28 = vector.broadcast %cst_25 : f32 to vector<32x512xf32>
    %29 = arith.maximumf %27, %28 : vector<32x512xf32>
    %c0_26 = arith.constant 0 : index
    %c0_27 = arith.constant 0 : index
    %30 = vector.load %arg10[%c0_26, %c0_27] : memref<1x32xf32, #tpu.memory_space<vmem>>, vector<1x32xf32>
    %c0_28 = arith.constant 0 : index
    %c0_29 = arith.constant 0 : index
    %31 = vector.load %arg11[%c0_28, %c0_29] : memref<1x1xf32, #tpu.memory_space<vmem>>, vector<1x1xf32>
    %cst_30 = arith.constant dense<0.000000e+00> : vector<1x512xf32>
    %32 = tpu.matmul %30, %29, %cst_30 {dimension_numbers = #tpu.dot_dimension_numbers<[1], [0], [0], [1], [0, 0, 1, 1], [], []>} : vector<1x32xf32>, vector<32x512xf32>, vector<1x512xf32> -> vector<1x512xf32>
    %33 = vector.broadcast %31 : vector<1x1xf32> to vector<1x512xf32>
    %34 = arith.addf %32, %33 : vector<1x512xf32>
    %c0_31 = arith.constant 0 : index
    %c0_32 = arith.constant 0 : index
    %35 = vector.load %arg13[%c0_31, %c0_32] : memref<1x512xf32, #tpu.memory_space<vmem>>, vector<1x512xf32>
    tpu.vector_store %arg13[%c0_31, %c0_32], %34 {strides = array<i32>} : memref<1x512xf32, #tpu.memory_space<vmem>>, vector<1x512xf32>,
    return
  }
  func.func @transform_0(%arg0: i32) -> (i32, i32) {
    %c0_i32 = arith.constant 0 : i32
    %c0_i32_0 = arith.constant 0 : i32
    return %c0_i32, %arg0 : i32, i32
  }
  func.func @transform_1(%arg0: i32) -> (i32, i32) {
    %c0_i32 = arith.constant 0 : i32
    %c0_i32_0 = arith.constant 0 : i32
    %c0_i32_1 = arith.constant 0 : i32
    return %c0_i32, %c0_i32_0 : i32, i32
  }
  func.func @transform_2(%arg0: i32) -> (i32, i32) {
    %c0_i32 = arith.constant 0 : i32
    %c0_i32_0 = arith.constant 0 : i32
    %c0_i32_1 = arith.constant 0 : i32
    return %c0_i32, %c0_i32_0 : i32, i32
  }
  func.func @transform_3(%arg0: i32) -> (i32, i32) {
    %c0_i32 = arith.constant 0 : i32
    %c0_i32_0 = arith.constant 0 : i32
    %c0_i32_1 = arith.constant 0 : i32
    return %c0_i32, %c0_i32_0 : i32, i32
  }
  func.func @transform_4(%arg0: i32) -> (i32, i32) {
    %c0_i32 = arith.constant 0 : i32
    %c0_i32_0 = arith.constant 0 : i32
    %c0_i32_1 = arith.constant 0 : i32
    return %c0_i32, %c0_i32_0 : i32, i32
  }
  func.func @transform_5(%arg0: i32) -> (i32, i32) {
    %c0_i32 = arith.constant 0 : i32
    %c0_i32_0 = arith.constant 0 : i32
    %c0_i32_1 = arith.constant 0 : i32
    return %c0_i32, %c0_i32_0 : i32, i32
  }
  func.func @transform_6(%arg0: i32) -> (i32, i32) {
    %c0_i32 = arith.constant 0 : i32
    %c0_i32_0 = arith.constant 0 : i32
    %c0_i32_1 = arith.constant 0 : i32
    return %c0_i32, %c0_i32_0 : i32, i32
  }
  func.func @transform_7(%arg0: i32) -> (i32, i32) {
    %c0_i32 = arith.constant 0 : i32
    %c0_i32_0 = arith.constant 0 : i32
    %c0_i32_1 = arith.constant 0 : i32
    return %c0_i32, %c0_i32_0 : i32, i32
  }
  func.func @transform_8(%arg0: i32) -> (i32, i32) {
    %c0_i32 = arith.constant 0 : i32
    %c0_i32_0 = arith.constant 0 : i32
    %c0_i32_1 = arith.constant 0 : i32
    return %c0_i32, %c0_i32_0 : i32, i32
  }
  func.func @transform_9(%arg0: i32) -> (i32, i32) {
    %c0_i32 = arith.constant 0 : i32
    %c0_i32_0 = arith.constant 0 : i32
    %c0_i32_1 = arith.constant 0 : i32
    return %c0_i32, %c0_i32_0 : i32, i32
  }
  func.func @transform_10(%arg0: i32) -> (i32, i32) {
    %c0_i32 = arith.constant 0 : i32
    %c0_i32_0 = arith.constant 0 : i32
    %c0_i32_1 = arith.constant 0 : i32
    return %c0_i32, %c0_i32_0 : i32, i32
  }
  func.func @transform_11(%arg0: i32) -> (i32, i32) {
    %c0_i32 = arith.constant 0 : i32
    %c0_i32_0 = arith.constant 0 : i32
    return %c0_i32, %arg0 : i32, i32
  }
  func.func @transform_12(%arg0: i32) -> (i32, i32) {
    %c0_i32 = arith.constant 0 : i32
    %c0_i32_0 = arith.constant 0 : i32
    return %c0_i32, %arg0 : i32, i32
  }
}

</mosaic_0001>

<bundles_post_ra>
// kernel: tpu_custom_call.1
= control target key start
LH: loop header
LB: loop body
LE: loop exit
PB: predicated region body
PF: predicated region fallthrough
CT: control target
= control target key end

     0   :  { %s1679_s0 = inlined_call_operand.vmem [shape: f32[16,512], index: 0, kind: input, shape index: {}]   ;;  %s1680_s1 = inlined_call_operand.vmem [shape: f32[32,16], index: 1, kind: input, shape index: {}]   ;;  %s1681_s2 = inlined_call_operand.vmem [shape: f32[32,1], index: 2, kind: input, shape index: {}]   ;;  %s1682_s3 = inlined_call_operand.vmem [shape: f32[32,32], index: 3, kind: input, shape index: {}]   ;;  %s1683_s4 = inlined_call_operand.vmem [shape: f32[32,1], index: 4, kind: input, shape index: {}]   ;;  %s1684_s5 = inlined_call_operand.vmem [shape: f32[32,32], index: 5, kind: input, shape index: {}]   ;;  %s1685_s6 = inlined_call_operand.vmem [shape: f32[32,1], index: 6, kind: input, shape index: {}]   ;;  %s1686_s7 = inlined_call_operand.vmem [shape: f32[32,32], index: 7, kind: input, shape index: {}]   ;;  %s1687_s8 = inlined_call_operand.vmem [shape: f32[32,1], index: 8, kind: input, shape index: {}]   ;;  %s1688_s9 = inlined_call_operand.vmem [shape: f32[1,32], index: 9, kind: input, shape index: {}]   ;;  %s1689_s10 = inlined_call_operand.<no memory space> [shape: f32[1,1], index: 10, kind: input, shape index: {}]   ;;  %s1690_s11 = inlined_call_operand.hbm [shape: f32[32,512], index: 11, kind: output, shape index: {0}]   ;;  %s1691_s12 = inlined_call_operand.hbm [shape: f32[1,512], index: 12, kind: output, shape index: {1}]  }
   0x1   :  { %v18_v0 = vstv %s1689_s10 }
   0x2   :  { %19 = vst [vmem:[#allocation2] sm:$0x1] %v18_v0 }
   0x3   :  { %20 = vsyncpa [#allocation4], 0  ;;  %v49_v1 = vld [vmem:[%s1679_s0 + $0x8] sm:$0xff]  ;;  %v51_v3 = vld [vmem:[%s1679_s0 + $0x18] sm:$0xff]  ;;  %v1389_v8 = vmov 0.0   ;;  %v1390_v13 = vmov 0  }
   0x4   :  { %v53_v2 = vld [vmem:[%s1679_s0 + $0x28] sm:$0xff]  ;;  %v55_v5 = vld [vmem:[%s1679_s0 + $0x38] sm:$0xff]  ;;  %v48_v6 = vld [vmem:[%s1679_s0] sm:$0xff]  ;;  %157 = vmatprep.mubr.f32.mxu0 %v1389_v8  ;;  %246 = vmatprep.mubr.f32.mxu1 %v1389_v8  ;;  %vm80_vm0 = vcmask 130048  }
   0x5   :  { %v1260_v4 = vpack.c.bf16 %v53_v2, %v49_v1  ;;  %v52_v7 = vld [vmem:[%s1679_s0 + $0x20] sm:$0xff]  ;;  %v1264_v9 = vpack.c.bf16 %v55_v5, %v51_v3  ;;  %v50_v11 = vld [vmem:[%s1679_s0 + $0x10] sm:$0xff]  ;;  %1339 = vset.pattern.permute.xlu0 %v1390_v13  ;;  %1340 = vset.pattern.permute.xlu1 %v1390_v13  ;;  %v57_v18 = vld [vmem:[%s1681_s2 + $0x8] sm:$0xff] }
   0x6   :  { %v1262_v10 = vpack.c.bf16 %v52_v7, %v48_v6  ;;  %v54_v12 = vld [vmem:[%s1679_s0 + $0x30] sm:$0xff]  ;;  %v44_v15 = vld [vmem:[%s1680_s1] sm:$0xff]  ;;  %v59_v19 = vld [vmem:[%s1681_s2 + $0x18] sm:$0xff] }
   0x7   :  { %1261 = vmatprep.subr.bf16.mxu0 %v1260_v4  ;;  %v1266_v14 = vpack.c.bf16 %v54_v12, %v50_v11  ;;  %1265 = vmatprep.subr.bf16.mxu1 %v1264_v9  ;;  %v56_v16 = vld [vmem:[%s1681_s2] sm:$0xff]  ;;  %v58_v17 = vld [vmem:[%s1681_s2 + $0x10] sm:$0xff]  ;;  %v45_v20 = vld [vmem:[%s1680_s1 + $0x8] sm:$0xff] }
   0x8   :  { %1263 = vmatpush1.bf16.msra.mxu0 %v1262_v10  ;;  %62 = vperm.xlu0 %1339, %v56_v16  }
   0x9   :  { %1267 = vmatpush1.bf16.msra.mxu1 %v1266_v14  ;;  %72 = vperm.xlu1 %1340, %v58_v17  }
   0xb   :  { %1226 = vmatmul.mubr.msk.f32.vlgmr.msra.gmra.mrb[0].mxu0 %vm80_vm0, %v44_v15 }
   0xc   :  { %1230 = vmatmul.mubr.msk.f32.vlgmr.msra.gmra.mrb[0].mxu1 %vm80_vm0, %v44_v15  ;;  %163 = vmatprep.mubr.f32.mxu0 %v1389_v8 }
   0xd   :  { %252 = vmatprep.mubr.f32.mxu1 %v1389_v8  ;;  %67 = vperm.xlu0 %1339, %v57_v18  }
   0xe   :  { %21 = vsyncpa [#allocation6], 0  ;;  %v291_v21 = vld [vmem:[%s1683_s4] sm:$0xff]  ;;  %77 = vperm.xlu1 %1340, %v59_v19   ;;  %v292_v22 = vld [vmem:[%s1683_s4 + $0x8] sm:$0xff]  ;;  %vm315_vm1 = vcmask 261120   ;;  %s1391_s14 = smov [#allocation3]  }
   0xf   :  { %1227 = vmatmul.mubr.msk.f32.gmra.mrb[2].mxu0 %vm80_vm0, %v45_v20  ;;  %v46_v23 = vld [vmem:[%s1680_s1 + $0x10] sm:$0xff]  ;;  %v294_v25 = vld [vmem:[%s1683_s4 + $0x18] sm:$0xff]  ;;  %v526_v27 = vld [vmem:[%s1685_s6] sm:$0xff]  ;;  %s1201_s15 = sshll.u32 %s1391_s14, 4  ;;  %s1202_s15 = int_to_ptr.vmem [resolvable:$true] %s1201_s15 }
  0x10   :  { %1231 = vmatmul.mubr.msk.f32.gmra.mrb[2].mxu1 %vm80_vm0, %v45_v20  ;;  %169 = vmatprep.mubr.f32.mxu0 %v1389_v8  ;;  %v293_v24 = vld [vmem:[%s1683_s4 + $0x10] sm:$0xff]  ;;  %v47_v26 = vld [vmem:[%s1680_s1 + $0x18] sm:$0xff]  ;;  %v527_v28 = vld [vmem:[%s1685_s6 + $0x8] sm:$0xff]  ;;  %p1346_p1 = scmp.lt.s32.totalorder %s1202_s15, %s1202_s15 }
  0x11   :  { %258 = vmatprep.mubr.f32.mxu1 %v1389_v8  ;;  %297 = vperm.xlu0 %1339, %v291_v21   ;;  %v528_v29 = vld [vmem:[%s1685_s6 + $0x10] sm:$0xff]  ;;  %v529_v30 = vld [vmem:[%s1685_s6 + $0x18] sm:$0xff]  ;;  %v776_v31 = vld [vmem:[%s1687_s8] sm:$0xff]  ;;  %s1341_s6 = scalar_lea.vmem %s1202_s15, 2048 }
  0x12   :  { %302 = vperm.xlu1 %1340, %v292_v22   ;;  %v777_v32 = vld [vmem:[%s1687_s8 + $0x8] sm:$0xff]  ;;  %v778_v33 = vld [vmem:[%s1687_s8 + $0x10] sm:$0xff]  ;;  %v779_v34 = vld [vmem:[%s1687_s8 + $0x18] sm:$0xff]  ;;  %p1342_p0 = scmp.ne.s32.totalorder %s1202_s15, %s1341_s6  ;;  %p1347_p2 = scmp.lt.s32.totalorder %s1341_s6, %s1341_s6 }
  0x13   :  { %1228 = vmatmul.mubr.msk.f32.gmra.mrb[4].mxu0 %vm80_vm0, %v46_v23  ;;  %v1007_v35 = vld [vmem:[#allocation2] sm:$0x1] }
  0x14   :  { %1232 = vmatmul.mubr.msk.f32.gmra.mrb[4].mxu1 %vm80_vm0, %v46_v23  ;;  %175 = vmatprep.mubr.f32.mxu0 %v1389_v8  ;;  %p1348_p3 = por %p1347_p2, %p1346_p1 }
  0x15   :  { %264 = vmatprep.mubr.f32.mxu1 %v1389_v8  ;;  %307 = vperm.xlu0 %1339, %v293_v24  }
  0x16   :  { %312 = vperm.xlu1 %1340, %v294_v25   ;;  %p1349_p4 = pnand %p1348_p3, %p1342_p0 }
  0x17   :  { %1229 = vmatmul.mubr.msk.f32.gmra.mrb[6].mxu0 %vm80_vm0, %v47_v26 }
  0x18   :  { %1233 = vmatmul.mubr.msk.f32.gmra.mrb[6].mxu1 %vm80_vm0, %v47_v26  ;;  %392 = vmatprep.mubr.f32.mxu0 %v1389_v8 }
  0x19   :  { %532 = vperm.xlu0 %1339, %v526_v27   ;;  %481 = vmatprep.mubr.f32.mxu1 %v1389_v8 }
  0x1a   :  { %537 = vperm.xlu1 %1340, %v527_v28  }
  0x1d   :  { %542 = vperm.xlu0 %1339, %v528_v29  }
  0x1e   :  { %547 = vperm.xlu1 %1340, %v529_v30  }
  0x21   :  { %782 = vperm.xlu0 %1339, %v776_v31  }
  0x22   :  { %787 = vperm.xlu1 %1340, %v777_v32  }
  0x25   :  { %792 = vperm.xlu0 %1339, %v778_v33   ;;  %v287_v33 = vld [vmem:[%s1682_s3] sm:$0xff] }
  0x26   :  { %797 = vperm.xlu1 %1340, %v779_v34   ;;  %v288_v34 = vld [vmem:[%s1682_s3 + $0x8] sm:$0xff] }
  0x29   :  { %1010 = vperm.xlu0 %1339, %v1007_v35   ;;  %v289_v35 = vld [vmem:[%s1682_s3 + $0x10] sm:$0xff] }
  0x87   :  { %v63_v36 = vpop.permute.xlu0 %62 }
  0x88   :  { %v73_v50 = vpop.permute.xlu1 %72 }
  0x8c   :  { %v68_v42 = vpop.permute.xlu0 %67 }
  0x8d   :  { %v78_v9 = vpop.permute.xlu1 %77 }
  0xde   :  { %v159_v37 = vpop.f32.mrb[0].mxu0 }
  0xdf   :  { %v248_v38 = vpop.f32.mrb[0].mxu1  ;;  %v161_v39 = vpop.f32.mrb[1].mxu0  ;;  %v160_v41 = vadd.f32 %v159_v37, %v63_v36 }
  0xe0   :  { %v250_v40 = vpop.f32.mrb[1].mxu1  ;;  %v249_v43 = vadd.f32 %v248_v38, %v63_v36  ;;  %v162_v44 = vadd.f32 %v161_v39, %v63_v36 }
  0xe1   :  { %v251_v46 = vadd.f32 %v250_v40, %v63_v36  ;;  %v271_v54 = vmax.f32 %v160_v41, 0.0  ;;  %v290_v36 = vld [vmem:[%s1682_s3 + $0x18] sm:$0xff]  ;;  %v298_v40 = vpop.permute.xlu0 %297 }
  0xe2   :  { %v165_v45 = vpop.f32.mrb[2].mxu0  ;;  %v273_v57 = vmax.f32 %v249_v43, 0.0  ;;  %v272_v58 = vmax.f32 %v162_v44, 0.0  ;;  %v303_v43 = vpop.permute.xlu1 %302 }
  0xe3   :  { %v166_v47 = vadd.f32 %v165_v45, %v68_v42  ;;  %v254_v48 = vpop.f32.mrb[2].mxu1  ;;  %v167_v49 = vpop.f32.mrb[3].mxu0  ;;  %v274_v62 = vmax.f32 %v251_v46, 0.0 }
  0xe4   :  { %v255_v51 = vadd.f32 %v254_v48, %v68_v42  ;;  %v168_v52 = vadd.f32 %v167_v49, %v68_v42  ;;  %v256_v53 = vpop.f32.mrb[3].mxu1 }
  0xe5   :  { %v275_v55 = vmax.f32 %v166_v47, 0.0  ;;  %v257_v56 = vadd.f32 %v256_v53, %v68_v42 }
  0xe6   :  { %v277_v59 = vmax.f32 %v255_v51, 0.0  ;;  %v276_v60 = vmax.f32 %v168_v52, 0.0  ;;  %v171_v61 = vpop.f32.mrb[4].mxu0 }
  0xe7   :  { %v1270_v63 = vpack.c.bf16 %v275_v55, %v271_v54  ;;  %v278_v0 = vmax.f32 %v257_v56, 0.0  ;;  %v260_v1 = vpop.f32.mrb[4].mxu1  ;;  %v173_v2 = vpop.f32.mrb[5].mxu0  ;;  %v172_v7 = vadd.f32 %v171_v61, %v73_v50 }
  0xe8   :  { %v1278_v3 = vpack.c.bf16 %v277_v59, %v273_v57  ;;  %v1268_v4 = vpack.c.bf16 %v276_v60, %v272_v58  ;;  %v262_v5 = vpop.f32.mrb[5].mxu1  ;;  %v261_v10 = vadd.f32 %v260_v1, %v73_v50  ;;  %v174_v11 = vadd.f32 %v173_v2, %v73_v50 }
  0xe9   :  { %v1276_v6 = vpack.c.bf16 %v278_v0, %v274_v62  ;;  %v263_v13 = vadd.f32 %v262_v5, %v73_v50  ;;  %v279_v20 = vmax.f32 %v172_v7, 0.0 }
  0xea   :  { %v177_v12 = vpop.f32.mrb[6].mxu0  ;;  %1269 = vmatprep.subr.bf16.mxu0 %v1268_v4  ;;  %v281_v23 = vmax.f32 %v261_v10, 0.0  ;;  %v280_v24 = vmax.f32 %v174_v11, 0.0  ;;  %v313_v10 = vpop.permute.xlu1 %312 }
  0xeb   :  { %v178_v14 = vadd.f32 %v177_v12, %v78_v9  ;;  %v266_v15 = vpop.f32.mrb[6].mxu1  ;;  %1277 = vmatprep.subr.bf16.mxu1 %v1276_v6  ;;  %v179_v16 = vpop.f32.mrb[7].mxu0  ;;  %1271 = vmatpush1.bf16.msra.mxu0 %v1270_v63  ;;  %v282_v27 = vmax.f32 %v263_v13, 0.0 }
  0xec   :  { %v267_v17 = vadd.f32 %v266_v15, %v78_v9  ;;  %v180_v18 = vadd.f32 %v179_v16, %v78_v9  ;;  %v268_v19 = vpop.f32.mrb[7].mxu1  ;;  %1279 = vmatpush1.bf16.msra.mxu1 %v1278_v3  ;;  %v308_v3 = vpop.permute.xlu0 %307 }
  0xed   :  { %v283_v21 = vmax.f32 %v178_v14, 0.0  ;;  %v269_v22 = vadd.f32 %v268_v19, %v78_v9 }
  0xee   :  { %v285_v25 = vmax.f32 %v267_v17, 0.0  ;;  %v284_v26 = vmax.f32 %v180_v18, 0.0 }
  0xef   :  { %v1274_v28 = vpack.c.bf16 %v283_v21, %v279_v20  ;;  %v286_v29 = vmax.f32 %v269_v22, 0.0 }
  0xf0   :  { %v1282_v30 = vpack.c.bf16 %v285_v25, %v281_v23  ;;  %v1272_v31 = vpack.c.bf16 %v284_v26, %v280_v24 }
  0xf1   :  { %v1280_v32 = vpack.c.bf16 %v286_v29, %v282_v27 }
  0xf2   :  { %1273 = vmatprep.subr.bf16.mxu0 %v1272_v31 }
  0xf3   :  { %1281 = vmatprep.subr.bf16.mxu1 %v1280_v32  ;;  %1275 = vmatpush1.bf16.msra.mxu0 %v1274_v28 }
  0xf4   :  { %1283 = vmatpush1.bf16.msra.mxu1 %v1282_v30 }
  0xf6   :  { %1234 = vmatmul.mubr.msk.f32.vlgmr.msra.gmra.mrb[8].mxu0 %vm315_vm1, %v287_v33 }
  0xf7   :  { %1238 = vmatmul.mubr.msk.f32.vlgmr.msra.gmra.mrb[8].mxu1 %vm315_vm1, %v287_v33  ;;  %398 = vmatprep.mubr.f32.mxu0 %v1389_v8 }
  0xf8   :  { %487 = vmatprep.mubr.f32.mxu1 %v1389_v8 }
  0xfa   :  { %1235 = vmatmul.mubr.msk.f32.gmra.mrb[10].mxu0 %vm315_vm1, %v288_v34 }
  0xfb   :  { %1239 = vmatmul.mubr.msk.f32.gmra.mrb[10].mxu1 %vm315_vm1, %v288_v34  ;;  %404 = vmatprep.mubr.f32.mxu0 %v1389_v8  ;;  %v522_v34 = vld [vmem:[%s1684_s5] sm:$0xff] }
  0xfc   :  { %493 = vmatprep.mubr.f32.mxu1 %v1389_v8 }
  0xfe   :  { %1236 = vmatmul.mubr.msk.f32.gmra.mrb[12].mxu0 %vm315_vm1, %v289_v35 }
  0xff   :  { %1240 = vmatmul.mubr.msk.f32.gmra.mrb[12].mxu1 %vm315_vm1, %v289_v35  ;;  %410 = vmatprep.mubr.f32.mxu0 %v1389_v8  ;;  %v523_v35 = vld [vmem:[%s1684_s5 + $0x8] sm:$0xff] }
 0x100   :  { %499 = vmatprep.mubr.f32.mxu1 %v1389_v8 }
 0x102   :  { %1237 = vmatmul.mubr.msk.f32.gmra.mrb[14].mxu0 %vm315_vm1, %v290_v36 }
 0x103   :  { %1241 = vmatmul.mubr.msk.f32.gmra.mrb[14].mxu1 %vm315_vm1, %v290_v36  ;;  %626 = vmatprep.mubr.f32.mxu0 %v1389_v8  ;;  %v524_v36 = vld [vmem:[%s1684_s5 + $0x10] sm:$0xff] }
 0x104   :  { %715 = vmatprep.mubr.f32.mxu1 %v1389_v8 }
 0x1c9   :  { %v394_v37 = vpop.f32.mrb[8].mxu0 }
 0x1ca   :  { %v483_v38 = vpop.f32.mrb[8].mxu1  ;;  %v396_v39 = vpop.f32.mrb[9].mxu0  ;;  %v395_v42 = vadd.f32 %v394_v37, %v298_v40  ;;  %v525_v37 = vld [vmem:[%s1684_s5 + $0x18] sm:$0xff] }
 0x1cb   :  { %v485_v41 = vpop.f32.mrb[9].mxu1  ;;  %v484_v44 = vadd.f32 %v483_v38, %v298_v40  ;;  %v397_v45 = vadd.f32 %v396_v39, %v298_v40  ;;  %v533_v38 = vpop.permute.xlu0 %532 }
 0x1cc   :  { %v486_v47 = vadd.f32 %v485_v41, %v298_v40  ;;  %v506_v54 = vmax.f32 %v395_v42, 0.0 }
 0x1cd   :  { %v400_v46 = vpop.f32.mrb[10].mxu0  ;;  %v508_v57 = vmax.f32 %v484_v44, 0.0  ;;  %v507_v58 = vmax.f32 %v397_v45, 0.0 }
 0x1ce   :  { %v401_v48 = vadd.f32 %v400_v46, %v303_v43  ;;  %v489_v49 = vpop.f32.mrb[10].mxu1  ;;  %v402_v50 = vpop.f32.mrb[11].mxu0  ;;  %v509_v62 = vmax.f32 %v486_v47, 0.0 }
 0x1cf   :  { %v490_v51 = vadd.f32 %v489_v49, %v303_v43  ;;  %v403_v52 = vadd.f32 %v402_v50, %v303_v43  ;;  %v491_v53 = vpop.f32.mrb[11].mxu1  ;;  %v538_v47 = vpop.permute.xlu1 %537 }
 0x1d0   :  { %v510_v55 = vmax.f32 %v401_v48, 0.0  ;;  %v492_v56 = vadd.f32 %v491_v53, %v303_v43 }
 0x1d1   :  { %v512_v59 = vmax.f32 %v490_v51, 0.0  ;;  %v511_v60 = vmax.f32 %v403_v52, 0.0  ;;  %v406_v61 = vpop.f32.mrb[12].mxu0 }
 0x1d2   :  { %v1286_v63 = vpack.c.bf16 %v510_v55, %v506_v54  ;;  %v513_v0 = vmax.f32 %v492_v56, 0.0  ;;  %v495_v1 = vpop.f32.mrb[12].mxu1  ;;  %v408_v2 = vpop.f32.mrb[13].mxu0  ;;  %v407_v9 = vadd.f32 %v406_v61, %v308_v3 }
 0x1d3   :  { %v1294_v4 = vpack.c.bf16 %v512_v59, %v508_v57  ;;  %v1284_v5 = vpack.c.bf16 %v511_v60, %v507_v58  ;;  %v497_v6 = vpop.f32.mrb[13].mxu1  ;;  %v496_v11 = vadd.f32 %v495_v1, %v308_v3  ;;  %v409_v12 = vadd.f32 %v408_v2, %v308_v3  ;;  %v543_v58 = vpop.permute.xlu0 %542 }
 0x1d4   :  { %v1292_v7 = vpack.c.bf16 %v513_v0, %v509_v62  ;;  %v498_v14 = vadd.f32 %v497_v6, %v308_v3  ;;  %v514_v21 = vmax.f32 %v407_v9, 0.0 }
 0x1d5   :  { %v412_v13 = vpop.f32.mrb[14].mxu0  ;;  %1285 = vmatprep.subr.bf16.mxu0 %v1284_v5  ;;  %v516_v24 = vmax.f32 %v496_v11, 0.0  ;;  %v515_v25 = vmax.f32 %v409_v12, 0.0 }
 0x1d6   :  { %v413_v15 = vadd.f32 %v412_v13, %v313_v10  ;;  %v501_v16 = vpop.f32.mrb[14].mxu1  ;;  %1293 = vmatprep.subr.bf16.mxu1 %v1292_v7  ;;  %v414_v17 = vpop.f32.mrb[15].mxu0  ;;  %1287 = vmatpush1.bf16.msra.mxu0 %v1286_v63  ;;  %v517_v28 = vmax.f32 %v498_v14, 0.0 }
 0x1d7   :  { %v502_v18 = vadd.f32 %v501_v16, %v313_v10  ;;  %v415_v19 = vadd.f32 %v414_v17, %v313_v10  ;;  %v503_v20 = vpop.f32.mrb[15].mxu1  ;;  %1295 = vmatpush1.bf16.msra.mxu1 %v1294_v4  ;;  %v548_v14 = vpop.permute.xlu1 %547 }
 0x1d8   :  { %v518_v22 = vmax.f32 %v413_v15, 0.0  ;;  %v504_v23 = vadd.f32 %v503_v20, %v313_v10 }
 0x1d9   :  { %v520_v26 = vmax.f32 %v502_v18, 0.0  ;;  %v519_v27 = vmax.f32 %v415_v19, 0.0 }
 0x1da   :  { %v1290_v29 = vpack.c.bf16 %v518_v22, %v514_v21  ;;  %v521_v30 = vmax.f32 %v504_v23, 0.0 }
 0x1db   :  { %v1298_v31 = vpack.c.bf16 %v520_v26, %v516_v24  ;;  %v1288_v32 = vpack.c.bf16 %v519_v27, %v515_v25 }
 0x1dc   :  { %v1296_v33 = vpack.c.bf16 %v521_v30, %v517_v28 }
 0x1dd   :  { %1289 = vmatprep.subr.bf16.mxu0 %v1288_v32 }
 0x1de   :  { %1297 = vmatprep.subr.bf16.mxu1 %v1296_v33  ;;  %1291 = vmatpush1.bf16.msra.mxu0 %v1290_v29 }
 0x1df   :  { %1299 = vmatpush1.bf16.msra.mxu1 %v1298_v31 }
 0x1e1   :  { %1242 = vmatmul.mubr.msk.f32.vlgmr.msra.gmra.mrb[16].mxu0 %vm315_vm1, %v522_v34 }
 0x1e2   :  { %1246 = vmatmul.mubr.msk.f32.vlgmr.msra.gmra.mrb[16].mxu1 %vm315_vm1, %v522_v34  ;;  %632 = vmatprep.mubr.f32.mxu0 %v1389_v8 }
 0x1e3   :  { %721 = vmatprep.mubr.f32.mxu1 %v1389_v8 }
 0x1e5   :  { %1243 = vmatmul.mubr.msk.f32.gmra.mrb[18].mxu0 %vm315_vm1, %v523_v35 }
 0x1e6   :  { %1247 = vmatmul.mubr.msk.f32.gmra.mrb[18].mxu1 %vm315_vm1, %v523_v35  ;;  %638 = vmatprep.mubr.f32.mxu0 %v1389_v8  ;;  %v772_v35 = vld [vmem:[%s1686_s7] sm:$0xff] }
 0x1e7   :  { %727 = vmatprep.mubr.f32.mxu1 %v1389_v8 }
 0x1e9   :  { %1244 = vmatmul.mubr.msk.f32.gmra.mrb[20].mxu0 %vm315_vm1, %v524_v36 }
 0x1ea   :  { %1248 = vmatmul.mubr.msk.f32.gmra.mrb[20].mxu1 %vm315_vm1, %v524_v36  ;;  %644 = vmatprep.mubr.f32.mxu0 %v1389_v8  ;;  %v773_v36 = vld [vmem:[%s1686_s7 + $0x8] sm:$0xff] }
 0x1eb   :  { %733 = vmatprep.mubr.f32.mxu1 %v1389_v8 }
 0x1ed   :  { %1245 = vmatmul.mubr.msk.f32.gmra.mrb[22].mxu0 %vm315_vm1, %v525_v37 }
 0x1ee   :  { %1249 = vmatmul.mubr.msk.f32.gmra.mrb[22].mxu1 %vm315_vm1, %v525_v37  ;;  %876 = vmatprep.mubr.f32.mxu0 %v1389_v8  ;;  %v774_v37 = vld [vmem:[%s1686_s7 + $0x10] sm:$0xff] }
 0x1ef   :  { %965 = vmatprep.mubr.f32.mxu1 %v1389_v8 }
 0x2b4   :  { %v628_v39 = vpop.f32.mrb[16].mxu0 }
 0x2b5   :  { %v629_v40 = vadd.f32 %v628_v39, %v533_v38  ;;  %v717_v41 = vpop.f32.mrb[16].mxu1  ;;  %v630_v42 = vpop.f32.mrb[17].mxu0 }
 0x2b6   :  { %v718_v43 = vadd.f32 %v717_v41, %v533_v38  ;;  %v631_v44 = vadd.f32 %v630_v42, %v533_v38  ;;  %v719_v45 = vpop.f32.mrb[17].mxu1  ;;  %v783_v42 = vpop.permute.xlu0 %782 }
 0x2b7   :  { %740 = vst [vmem:[#allocation3] sm:$0xff] %v629_v40  ;;  %v720_v46 = vadd.f32 %v719_v45, %v533_v38  ;;  %v756_v55 = vmax.f32 %v629_v40, 0.0  ;;  %v775_v38 = vld [vmem:[%s1686_s7 + $0x18] sm:$0xff]  ;;  %v788_v45 = vpop.permute.xlu1 %787 }
 0x2b8   :  { %742 = vst [vmem:[#allocation3 + $0x10] sm:$0xff] %v718_v43  ;;  %741 = vst [vmem:[#allocation3 + $0x8] sm:$0xff] %v631_v44  ;;  %v634_v48 = vpop.f32.mrb[18].mxu0  ;;  %v758_v59 = vmax.f32 %v718_v43, 0.0  ;;  %v757_v60 = vmax.f32 %v631_v44, 0.0 }
 0x2b9   :  { %743 = vst [vmem:[#allocation3 + $0x18] sm:$0xff] %v720_v46  ;;  %v635_v49 = vadd.f32 %v634_v48, %v538_v47  ;;  %v723_v50 = vpop.f32.mrb[18].mxu1  ;;  %v636_v51 = vpop.f32.mrb[19].mxu0  ;;  %v759_v0 = vmax.f32 %v720_v46, 0.0 }
 0x2ba   :  { %v724_v52 = vadd.f32 %v723_v50, %v538_v47  ;;  %v637_v53 = vadd.f32 %v636_v51, %v538_v47  ;;  %v725_v54 = vpop.f32.mrb[19].mxu1 }
 0x2bb   :  { %744 = vst [vmem:[#allocation3 + $0x20] sm:$0xff] %v635_v49  ;;  %v760_v56 = vmax.f32 %v635_v49, 0.0  ;;  %v726_v57 = vadd.f32 %v725_v54, %v538_v47 }
 0x2bc   :  { %746 = vst [vmem:[#allocation3 + $0x30] sm:$0xff] %v724_v52  ;;  %v762_v61 = vmax.f32 %v724_v52, 0.0  ;;  %745 = vst [vmem:[#allocation3 + $0x28] sm:$0xff] %v637_v53  ;;  %v761_v62 = vmax.f32 %v637_v53, 0.0  ;;  %v640_v63 = vpop.f32.mrb[20].mxu0 }
 0x2bd   :  { %v1302_v1 = vpack.c.bf16 %v760_v56, %v756_v55  ;;  %747 = vst [vmem:[#allocation3 + $0x38] sm:$0xff] %v726_v57  ;;  %v763_v2 = vmax.f32 %v726_v57, 0.0  ;;  %v641_v3 = vadd.f32 %v640_v63, %v543_v58  ;;  %v729_v4 = vpop.f32.mrb[20].mxu1  ;;  %v642_v5 = vpop.f32.mrb[21].mxu0 }
 0x2be   :  { %v1310_v6 = vpack.c.bf16 %v762_v61, %v758_v59  ;;  %v730_v7 = vadd.f32 %v729_v4, %v543_v58  ;;  %v643_v9 = vadd.f32 %v642_v5, %v543_v58  ;;  %v731_v10 = vpop.f32.mrb[21].mxu1  ;;  %v1300_v11 = vpack.c.bf16 %v761_v62, %v757_v60  ;;  %v793_v4 = vpop.permute.xlu0 %792 }
 0x2bf   :  { %748 = vst [vmem:[#allocation3 + $0x40] sm:$0xff] %v641_v3  ;;  %v732_v12 = vadd.f32 %v731_v10, %v543_v58  ;;  %v1308_v13 = vpack.c.bf16 %v763_v2, %v759_v0  ;;  %v764_v22 = vmax.f32 %v641_v3, 0.0 }
 0x2c0   :  { %750 = vst [vmem:[#allocation3 + $0x50] sm:$0xff] %v730_v7  ;;  %749 = vst [vmem:[#allocation3 + $0x48] sm:$0xff] %v643_v9  ;;  %v646_v15 = vpop.f32.mrb[22].mxu0  ;;  %1301 = vmatprep.subr.bf16.mxu0 %v1300_v11  ;;  %v766_v25 = vmax.f32 %v730_v7, 0.0  ;;  %v765_v26 = vmax.f32 %v643_v9, 0.0  ;;  %v798_v11 = vpop.permute.xlu1 %797 }
 0x2c1   :  { %751 = vst [vmem:[#allocation3 + $0x58] sm:$0xff] %v732_v12  ;;  %v647_v16 = vadd.f32 %v646_v15, %v548_v14  ;;  %v735_v17 = vpop.f32.mrb[22].mxu1  ;;  %1309 = vmatprep.subr.bf16.mxu1 %v1308_v13  ;;  %v648_v18 = vpop.f32.mrb[23].mxu0  ;;  %1303 = vmatpush1.bf16.msra.mxu0 %v1302_v1  ;;  %v767_v29 = vmax.f32 %v732_v12, 0.0 }
 0x2c2   :  { %v736_v19 = vadd.f32 %v735_v17, %v548_v14  ;;  %v649_v20 = vadd.f32 %v648_v18, %v548_v14  ;;  %v737_v21 = vpop.f32.mrb[23].mxu1  ;;  %1311 = vmatpush1.bf16.msra.mxu1 %v1310_v6 }
 0x2c3   :  { %752 = vst [vmem:[#allocation3 + $0x60] sm:$0xff] %v647_v16  ;;  %v768_v23 = vmax.f32 %v647_v16, 0.0  ;;  %v738_v24 = vadd.f32 %v737_v21, %v548_v14 }
 0x2c4   :  { %754 = vst [vmem:[#allocation3 + $0x70] sm:$0xff] %v736_v19  ;;  %v770_v27 = vmax.f32 %v736_v19, 0.0  ;;  %753 = vst [vmem:[#allocation3 + $0x68] sm:$0xff] %v649_v20  ;;  %v769_v28 = vmax.f32 %v649_v20, 0.0 }
 0x2c5   :  { %v1306_v30 = vpack.c.bf16 %v768_v23, %v764_v22  ;;  %755 = vst [vmem:[#allocation3 + $0x78] sm:$0xff] %v738_v24  ;;  %v771_v31 = vmax.f32 %v738_v24, 0.0 }
 0x2c6   :  { %v1314_v32 = vpack.c.bf16 %v770_v27, %v766_v25  ;;  %v1304_v33 = vpack.c.bf16 %v769_v28, %v765_v26 }
 0x2c7   :  { %v1312_v34 = vpack.c.bf16 %v771_v31, %v767_v29 }
 0x2c8   :  { %1305 = vmatprep.subr.bf16.mxu0 %v1304_v33 }
 0x2c9   :  { %1313 = vmatprep.subr.bf16.mxu1 %v1312_v34  ;;  %1307 = vmatpush1.bf16.msra.mxu0 %v1306_v30 }
 0x2ca   :  { %1315 = vmatpush1.bf16.msra.mxu1 %v1314_v32 }
 0x2cc   :  { %1250 = vmatmul.mubr.msk.f32.vlgmr.msra.gmra.mrb[24].mxu0 %vm315_vm1, %v772_v35 }
 0x2cd   :  { %1254 = vmatmul.mubr.msk.f32.vlgmr.msra.gmra.mrb[24].mxu1 %vm315_vm1, %v772_v35  ;;  %882 = vmatprep.mubr.f32.mxu0 %v1389_v8  ;;  %v1006_v35 = vld [vmem:[%s1688_s9] sm:$0x1] }
 0x2ce   :  { %971 = vmatprep.mubr.f32.mxu1 %v1389_v8 }
 0x2d0   :  { %1251 = vmatmul.mubr.msk.f32.gmra.mrb[26].mxu0 %vm315_vm1, %v773_v36 }
 0x2d1   :  { %1255 = vmatmul.mubr.msk.f32.gmra.mrb[26].mxu1 %vm315_vm1, %v773_v36  ;;  %888 = vmatprep.mubr.f32.mxu0 %v1389_v8 }
 0x2d2   :  { %977 = vmatprep.mubr.f32.mxu1 %v1389_v8 }
 0x2d4   :  { %1252 = vmatmul.mubr.msk.f32.gmra.mrb[28].mxu0 %vm315_vm1, %v774_v37 }
 0x2d5   :  { %1256 = vmatmul.mubr.msk.f32.gmra.mrb[28].mxu1 %vm315_vm1, %v774_v37  ;;  %894 = vmatprep.mubr.f32.mxu0 %v1389_v8 }
 0x2d6   :  { %983 = vmatprep.mubr.f32.mxu1 %v1389_v8 }
 0x2d8   :  { %1253 = vmatmul.mubr.msk.f32.gmra.mrb[30].mxu0 %vm315_vm1, %v775_v38 }
 0x2d9   :  { %1257 = vmatmul.mubr.msk.f32.gmra.mrb[30].mxu1 %vm315_vm1, %v775_v38  ;;  %1084 = vmatprep.mubr.f32.mxu0 %v1389_v8 }
 0x2da   :  { %1155 = vmatprep.mubr.f32.mxu1 %v1389_v8 }
 0x39f   :  { %v878_v39 = vpop.f32.mrb[24].mxu0 }
 0x3a0   :  { %v967_v40 = vpop.f32.mrb[24].mxu1  ;;  %v880_v41 = vpop.f32.mrb[25].mxu0  ;;  %v879_v44 = vadd.f32 %v878_v39, %v783_v42 }
 0x3a1   :  { %v969_v43 = vpop.f32.mrb[25].mxu1  ;;  %v968_v46 = vadd.f32 %v967_v40, %v783_v42  ;;  %v881_v47 = vadd.f32 %v880_v41, %v783_v42 }
 0x3a2   :  { %v970_v49 = vadd.f32 %v969_v43, %v783_v42  ;;  %v990_v56 = vmax.f32 %v879_v44, 0.0 }
 0x3a3   :  { %v884_v48 = vpop.f32.mrb[26].mxu0  ;;  %v992_v58 = vmax.f32 %v968_v46, 0.0  ;;  %v991_v59 = vmax.f32 %v881_v47, 0.0 }
 0x3a4   :  { %v885_v50 = vadd.f32 %v884_v48, %v788_v45  ;;  %v973_v51 = vpop.f32.mrb[26].mxu1  ;;  %v886_v52 = vpop.f32.mrb[27].mxu0  ;;  %v993_v63 = vmax.f32 %v970_v49, 0.0 }
 0x3a5   :  { %v974_v53 = vadd.f32 %v973_v51, %v788_v45  ;;  %v887_v54 = vadd.f32 %v886_v52, %v788_v45  ;;  %v975_v55 = vpop.f32.mrb[27].mxu1 }
 0x3a6   :  { %v994_v57 = vmax.f32 %v885_v50, 0.0  ;;  %v976_v8 = vadd.f32 %v975_v55, %v788_v45 }
 0x3a7   :  { %v996_v60 = vmax.f32 %v974_v53, 0.0  ;;  %v995_v61 = vmax.f32 %v887_v54, 0.0  ;;  %v890_v62 = vpop.f32.mrb[28].mxu0 }
 0x3a8   :  { %v1318_v0 = vpack.c.bf16 %v994_v57, %v990_v56  ;;  %v997_v1 = vmax.f32 %v976_v8, 0.0  ;;  %v979_v2 = vpop.f32.mrb[28].mxu1  ;;  %v892_v3 = vpop.f32.mrb[29].mxu0  ;;  %v891_v10 = vadd.f32 %v890_v62, %v793_v4 }
 0x3a9   :  { %v1326_v5 = vpack.c.bf16 %v996_v60, %v992_v58  ;;  %v1316_v6 = vpack.c.bf16 %v995_v61, %v991_v59  ;;  %v981_v7 = vpop.f32.mrb[29].mxu1  ;;  %v980_v12 = vadd.f32 %v979_v2, %v793_v4  ;;  %v893_v13 = vadd.f32 %v892_v3, %v793_v4 }
 0x3aa   :  { %v1324_v9 = vpack.c.bf16 %v997_v1, %v993_v63  ;;  %v982_v15 = vadd.f32 %v981_v7, %v793_v4  ;;  %v998_v22 = vmax.f32 %v891_v10, 0.0 }
 0x3ab   :  { %v896_v14 = vpop.f32.mrb[30].mxu0  ;;  %1317 = vmatprep.subr.bf16.mxu0 %v1316_v6  ;;  %v1000_v25 = vmax.f32 %v980_v12, 0.0  ;;  %v999_v26 = vmax.f32 %v893_v13, 0.0 }
 0x3ac   :  { %v897_v16 = vadd.f32 %v896_v14, %v798_v11  ;;  %v985_v17 = vpop.f32.mrb[30].mxu1  ;;  %1325 = vmatprep.subr.bf16.mxu1 %v1324_v9  ;;  %v898_v18 = vpop.f32.mrb[31].mxu0  ;;  %1319 = vmatpush1.bf16.msra.mxu0 %v1318_v0  ;;  %v1001_v29 = vmax.f32 %v982_v15, 0.0 }
 0x3ad   :  { %v986_v19 = vadd.f32 %v985_v17, %v798_v11  ;;  %v899_v20 = vadd.f32 %v898_v18, %v798_v11  ;;  %v987_v21 = vpop.f32.mrb[31].mxu1  ;;  %1327 = vmatpush1.bf16.msra.mxu1 %v1326_v5 }
 0x3ae   :  { %v1002_v23 = vmax.f32 %v897_v16, 0.0  ;;  %v988_v24 = vadd.f32 %v987_v21, %v798_v11 }
 0x3af   :  { %v1004_v27 = vmax.f32 %v986_v19, 0.0  ;;  %v1003_v28 = vmax.f32 %v899_v20, 0.0 }
 0x3b0   :  { %v1322_v30 = vpack.c.bf16 %v1002_v23, %v998_v22  ;;  %v1005_v31 = vmax.f32 %v988_v24, 0.0 }
 0x3b1   :  { %v1330_v32 = vpack.c.bf16 %v1004_v27, %v1000_v25  ;;  %v1320_v33 = vpack.c.bf16 %v1003_v28, %v999_v26 }
 0x3b2   :  { %v1328_v34 = vpack.c.bf16 %v1005_v31, %v1001_v29 }
 0x3b3   :  { %1321 = vmatprep.subr.bf16.mxu0 %v1320_v33 }
 0x3b4   :  { %1329 = vmatprep.subr.bf16.mxu1 %v1328_v34  ;;  %1323 = vmatpush1.bf16.msra.mxu0 %v1322_v30 }
 0x3b5   :  { %1331 = vmatpush1.bf16.msra.mxu1 %v1330_v32 }
 0x3b7   :  { %1258 = vmatmul.mubr.msk.f32.vlgmr.msra.gmra.mrb[32].mxu0 %vm315_vm1, %v1006_v35 }
 0x3b8   :  { %1259 = vmatmul.mubr.msk.f32.vlgmr.msra.gmra.mrb[32].mxu1 %vm315_vm1, %v1006_v35 }
 0x3b9   :  { %1352 = shalt.err (!%p1349_p4)
}
 0x3ba   :  { %s1353_s17 = scalar_lea.hbm %s1690_s11, 2048 }
 0x3bb   :  { %p1354_p5 = scmp.ne.s32.totalorder %s1690_s11, %s1353_s17  ;;  %p1357_p6 = scmp.lt.u32.totalorder %s1353_s17, %s1690_s11 }
 0x3bd   :  { %p1359_p7 = pnand %p1357_p6, %p1354_p5 }
 0x3bf   :  { %1362 = shalt.err (!%p1359_p7)
}
 0x3c0   :  { %s1392_s21 = smov 512   ;;  %s1393_s3 = smov 32   ;;  %v1013_v36 = vlaneseq  ;;  %v1394_v38 = vmov 1966171168   ;;  %v1011_v41 = vpop.permute.xlu0 %1010 }
 0x3c1   :  { %1207 = dma.vmem_to_hbm [thread:$0]  %s1202_s15, 2048, %s1690_s11, [#allocation4], %s1392_s21, %s1392_s21, %s1393_s3   ;;  %v1169_v39 = vunpack.c.l.s4 %v1394_v38 }
 0x3c2   :  { %v1014_v37 = vshrl.u32 %v1013_v36, 7  ;;  %s1395_s11 = smov [#allocation5]   ;;  %vm1193_vm2 = vcmp.lt.s32.totalorder %v1013_v36, 512 }
 0x3c3   :  { %v1170_v42 = vunpack.c.0.s8 %v1169_v39  ;;  %s1214_s24 = sshll.u32 %s1395_s11, 4  ;;  %s1215_s24 = int_to_ptr.vmem [resolvable:$true] %s1214_s24 }
 0x3c4   :  { %v1015_v40 = vsub.s32 0, %v1014_v37  ;;  %s1363_s0 = scalar_lea.vmem %s1215_s24, 64  ;;  %p1368_p9 = scmp.lt.s32.totalorder %s1215_s24, %s1215_s24 }
 0x3c5   :  { %v1173_v48 = vsub.s32 %v1170_v42, %v1014_v37  ;;  %p1364_p8 = scmp.ne.s32.totalorder %s1215_s24, %s1363_s0  ;;  %p1369_p10 = scmp.lt.s32.totalorder %s1363_s0, %s1363_s0 }
 0x3c6   :  { %v1016_v43 = vrot.slane %v1011_v41, %v1015_v40 }
 0x3c7   :  { %p1370_p11 = por %p1369_p10, %p1368_p9 }
 0x3c9   :  { %p1371_p12 = pnand %p1370_p11, %p1364_p8 }
 0x48a   :  { %v1086_v44 = vpop.f32.mrb[32].mxu0 }
 0x48b   :  { %v1087_v45 = vadd.f32 %v1086_v44, %v1016_v43  ;;  %v1157_v46 = vpop.f32.mrb[32].mxu1  ;;  %v1088_v47 = vpop.f32.mrb[33].mxu0 }
 0x48c   :  { %v1158_v49 = vadd.f32 %v1157_v46, %v1016_v43  ;;  %v1089_v50 = vadd.f32 %v1088_v47, %v1016_v43  ;;  %v1159_v51 = vpop.f32.mrb[33].mxu1 }
 0x48d   :  { %v1160_v52 = vadd.f32 %v1159_v51, %v1016_v43 }
 0x48e   :  { %v1166_v53 = vcombine.low %v1087_v45, %v1089_v50 }
 0x48f   :  { %v1167_v54 = vcombine.low %v1158_v49, %v1160_v52 }
 0x490   :  { %v1174_v55 = vrot.slane %v1166_v53, %v1173_v48 }
 0x491   :  { %v1181_v56 = vrot.slane %v1167_v54, %v1173_v48 }
 0x493   :  { %v1182_v57 = vcombine.low %v1174_v55, %v1181_v56 }
 0x495   :  { %v1189_v8 = vrot.slane %v1182_v57, %v1173_v48 }
 0x497   :  { %1195 = vst.msk [vmem:[#allocation5] sm:$0xf] %vm1193_vm2, %v1189_v8 }
 0x498   :  { %1374 = shalt.err (!%p1371_p12)
}
 0x499   :  { %s1375_s25 = scalar_lea.hbm %s1691_s12, 64 }
 0x49a   :  { %p1376_p13 = scmp.ne.s32.totalorder %s1691_s12, %s1375_s25  ;;  %p1379_p0 = scmp.lt.u32.totalorder %s1375_s25, %s1691_s12 }
 0x49c   :  { %p1381_p1 = pnand %p1379_p0, %p1376_p13 }
 0x49e   :  { %1384 = shalt.err (!%p1381_p1)
}
 0x49f   :  { %1217 = dma.vmem_to_hbm [thread:$0]  %s1215_s24, 64, %s1691_s12, [#allocation6]  }
 0x4a0   :  { %1385 = dma.done.wait [#allocation4], 2048  }
 0x4a1   :  { %1386 = vsyncadd [#allocation4], 4294965248 }
 0x4a2   :  { %1387 = dma.done.wait [#allocation6], 64  }
 0x4a3   :  { %1388 = vsyncadd [#allocation6], 4294967232 }
 0x4a4   :  { %1224 = vsyncpa [#allocation4], 1 }
 0x4a5   :  { %1225 = vsyncpa [#allocation6], 1 }

</bundles_post_ra>
